<compile_context>
chip_gen: v7x
topology: tpu7x:2x2x1
jax: 0.10.0
libtpu: 0.0.40
codegen_flags: <defaults>
</compile_context>

<pallas_src>
import functools
import math

import jax
import jax.numpy as jnp
from jax.experimental import pallas as pl
from jax.experimental.pallas import tpu as pltpu


def _criterion_kernel(x_ref, w_ref, b_ref, lab_ref, out_ref, *, true_b, tile_b):
    i = pl.program_id(0)

    # Cast to bf16 inside the kernel (free VPU work under the DMA): the
    # dominant x stream is read from HBM exactly once, in its native dtype.
    x = x_ref[...].astype(jnp.bfloat16)              # (TB, F) bf16
    w = w_ref[...]                                   # (F, C)  bf16
    bias = b_ref[...]                                # (1, C)  f32
    labels = lab_ref[...]                            # (TB, 1) int32

    # logits = x @ W_perm + b  (bf16 MXU matmul, f32 accumulation)
    logits = jnp.dot(x, w, preferred_element_type=jnp.float32) + bias   # (TB, C)
    tb, num_classes = logits.shape

    # Rows beyond the true batch (padded tail tile) -> neutralize before any
    # transcendental and mask their contributions out of both reductions.
    row_ids = i * tile_b + jax.lax.broadcasted_iota(jnp.int32, (tb, 1), 0)
    valid = row_ids < true_b                         # (TB, 1) bool
    logits = jnp.where(valid, logits, 0.0)

    # --- cross entropy (sum over valid rows), stable log-softmax in f32 ---
    m = jnp.max(logits, axis=-1, keepdims=True)                              # (TB, 1)
    lse = m + jnp.log(jnp.sum(jnp.exp(logits - m), axis=-1, keepdims=True))  # (TB, 1)
    class_ids = jax.lax.broadcasted_iota(jnp.int32, (tb, num_classes), 1)
    is_label = class_ids == labels
    true_logit = jnp.sum(jnp.where(is_label, logits, 0.0),
                         axis=-1, keepdims=True)                             # (TB, 1)
    loss_sum = jnp.sum(jnp.where(valid, lse - true_logit, 0.0))

    # --- argmax, first-occurrence tie-break (matches torch .max(1)) ---
    preds = jnp.min(jnp.where(logits == m, class_ids, num_classes),
                    axis=-1, keepdims=True)                                  # (TB, 1)
    correct = jnp.sum(jnp.where(valid & (preds == labels), 1.0, 0.0))

    # Per-tile partials written as one full (8,128) f32 tile (lane/sublane
    # dense, unmasked vst): sublane 0 -> loss_sum, sublane 1 -> correct count.
    sub = jax.lax.broadcasted_iota(jnp.int32, (1, 8, 128), 1)
    out_ref[...] = jnp.where(sub == 0, loss_sum,
                             jnp.where(sub == 1, correct, 0.0)).astype(jnp.float32)


_TB_MAX = 2048  # max batch tile (multiple of 16)


def _round_up(n, m):
    return ((n + m - 1) // m) * m


def _select_batch_tile(batch, num_features, itemsize):
    """VMEM-aware batch-tile selection.

    The double-buffered x tile is budgeted at <= ~16 MiB (of the 32 MiB scoped
    limit), leaving headroom for the in-kernel bf16 copy, the lane-padded
    logits intermediates, the label tile and the weight/bias/out buffers, so
    the same tiling fits v5e / v6e and v7x's 64 MiB VMEM.
    """
    budget = 16 * 1024 * 1024
    tb = (budget // (2 * num_features * itemsize)) // 16 * 16
    tb = max(16, min(_TB_MAX, tb))
    # Keep >= 2 tiles whenever the batch allows so both v7x TensorCores get
    # work on the "parallel" grid axis.
    if batch > 16:
        tb = min(tb, _round_up(pl.cdiv(batch, 2), 16))
    if tb >= batch:
        return batch          # single full-extent tile (always a legal block)
    return tb


def category_criterion(x, encoded_data, label, w_t, bias, *, tile_b=None):
    """Forward pass of CategoryCriterion (pool=None).

    x:            (B, seqSize, dimAR) float  -- same layout PyTorch receives
    encoded_data: unused (kept for signature parity)
    label:        (B,) int
    w_t:          (numFeatures, numClasses)  -- nn.Linear weight, transposed
    bias:         (numClasses,)
    tile_b:       optional batch tile override (multiple of 16 if < B)
    returns (loss (1,1) f32, accuracy (1,1) f32)
    """
    del encoded_data
    B, seq, dim_ar = x.shape
    num_features = dim_ar * seq
    num_classes = w_t.shape[1]

    # Permute the *weight* once (tiny (F,C) tensor) so x can be streamed in
    # its natural (B, seq, dimAR) layout: torch feature order d*seq+s maps to
    # the natural order s*dimAR+d.
    w_perm = jnp.transpose(w_t.reshape(dim_ar, seq, num_classes),
                           (1, 0, 2)).reshape(num_features, num_classes)
    w_bf16 = w_perm.astype(jnp.bfloat16)

    # Free row-major flatten; NO standalone dtype-convert pass over x here --
    # the cast to bf16 happens inside the kernel, under the DMA.
    x_flat = x.reshape(B, num_features)
    b_row = bias.reshape(1, num_classes).astype(jnp.float32)
    lab = label.astype(jnp.int32).reshape(B, 1)

    itemsize = jnp.dtype(x.dtype).itemsize
    tb = tile_b if tile_b is not None else _select_batch_tile(B, num_features, itemsize)
    nb = pl.cdiv(B, tb)

    partials = pl.pallas_call(
        functools.partial(_criterion_kernel, true_b=B, tile_b=tb),
        out_shape=jax.ShapeDtypeStruct((nb, 8, 128), jnp.float32),
        grid=(nb,),
        in_specs=[
            pl.BlockSpec((tb, num_features), lambda i: (i, 0)),           # x tile
            pl.BlockSpec((num_features, num_classes), lambda i: (0, 0)),  # weight
            pl.BlockSpec((1, num_classes), lambda i: (0, 0)),             # bias
            pl.BlockSpec((tb, 1), lambda i: (i, 0)),                      # labels
        ],
        out_specs=pl.BlockSpec((1, 8, 128), lambda i: (i, 0, 0)),
        compiler_params=pltpu.CompilerParams(
            dimension_semantics=("parallel",),
            vmem_limit_bytes=32 * 1024 * 1024,
        ),
        cost_estimate=pl.CostEstimate(
            flops=2 * B * num_features * num_classes,
            transcendentals=B * num_classes,
            bytes_accessed=(B * num_features * itemsize          # x (native dtype)
                            + num_features * num_classes * 2     # weight (bf16)
                            + num_classes * 4                    # bias
                            + B * 4                              # labels
                            + nb * 8 * 128 * 4),                 # partial outputs
        ),
    )(x_flat, w_bf16, b_row, lab)

    # tiny final reduction in the wrapper (enables the parallel grid axis)
    loss = (jnp.sum(partials[:, 0, 0]) / jnp.float32(B)).reshape(1, 1)
    acc = (jnp.sum(partials[:, 1, 0]) / jnp.float32(B)).reshape(1, 1)
    return loss, acc


def _reference_bf16(x, label, w_t, bias):
    # matches the kernel's bf16-matmul / f32-accumulate numerics
    B, seq, dim_ar = x.shape
    x_flat = jnp.transpose(x, (0, 2, 1)).reshape(B, dim_ar * seq).astype(jnp.bfloat16)
    logits = jnp.dot(x_flat, w_t.astype(jnp.bfloat16),
                     preferred_element_type=jnp.float32) + bias[None, :]
    lse = jax.scipy.special.logsumexp(logits, axis=-1)
    loss = jnp.mean(lse - logits[jnp.arange(B), label])
    acc = jnp.mean((jnp.argmax(logits, axis=-1) == label).astype(jnp.float32))
    return loss, acc


def _reference_f32(x, label, w_t, bias):
    # exact PyTorch-module numerics (f32 Linear + CrossEntropyLoss)
    B, seq, dim_ar = x.shape
    x_flat = jnp.transpose(x, (0, 2, 1)).reshape(B, dim_ar * seq)
    logits = x_flat @ w_t + bias[None, :]
    lse = jax.scipy.special.logsumexp(logits, axis=-1)
    loss = jnp.mean(lse - logits[jnp.arange(B), label])
    acc = jnp.mean((jnp.argmax(logits, axis=-1) == label).astype(jnp.float32))
    return loss, acc


if __name__ == "__main__":
    # module hyper-params (small, consistent with the forward)
    hiddenGar, sizeWindow, downSampling, numClasses = 32, 128, 16, 10
    seqSize = sizeWindow // downSampling          # 8
    numFeatures = hiddenGar * seqSize             # 256

    key = jax.random.PRNGKey(0)
    kx, kw, kb = jax.random.split(key, 3)

    # deterministic Linear params (nn.Linear(numFeatures, numClasses)):
    # weight (numClasses, numFeatures) -> pass its transpose (numFeatures, numClasses)
    bound = 1.0 / math.sqrt(numFeatures)
    w = jax.random.uniform(kw, (numClasses, numFeatures), jnp.float32, -bound, bound)
    bias = jax.random.uniform(kb, (numClasses,), jnp.float32, -bound, bound)
    w_t = w.T

    def run_case(batch, tile_b=None):
        kx1, kl1, ke1 = jax.random.split(jax.random.fold_in(kx, batch), 3)
        x = jax.random.normal(kx1, (batch, seqSize, hiddenGar), dtype=jnp.float32)
        encoded = jax.random.normal(ke1, (batch, seqSize, hiddenGar), dtype=jnp.float32)
        label = jax.random.randint(kl1, (batch,), 0, numClasses, dtype=jnp.int32)

        loss, acc = category_criterion(x, encoded, label, w_t, bias, tile_b=tile_b)
        jax.block_until_ready((loss, acc))
        assert loss.shape == (1, 1) and acc.shape == (1, 1)

        ref_loss, ref_acc = _reference_bf16(x, label, w_t, bias)
        assert jnp.allclose(loss[0, 0], ref_loss, atol=1e-3, rtol=1e-3)
        assert jnp.allclose(acc[0, 0], ref_acc, atol=1e-6)

        # loose check vs the pure-f32 module numerics (bf16 MXU deviation ~1e-3)
        f32_loss, _ = _reference_f32(x, label, w_t, bias)
        assert jnp.allclose(loss[0, 0], f32_loss, atol=3e-2, rtol=3e-2)

    run_case(4)                 # single-tile path (tile == full batch)
    run_case(40)                # auto tiling -> 2 tiles (v7x dual-TC path) + padded tail
    run_case(40, tile_b=16)     # forced multi-tile path + padded-tail row masking

    print("KERNEL_OK")
</pallas_src>

<mosaic_0001>
module attributes {stable_mosaic.version = 11 : i64} {
  func.func @_criterion_kernel(%arg0: i32, %arg1: memref<4x256xf32, #tpu.memory_space<vmem>>, %arg2: memref<256x10xbf16, #tpu.memory_space<vmem>>, %arg3: memref<1x10xf32, #tpu.memory_space<vmem>>, %arg4: memref<4x1xi32, #tpu.memory_space<vmem>>, %arg5: memref<1x8x128xf32, #tpu.memory_space<vmem>>) attributes {dimension_semantics = [#tpu.dimension_semantics<parallel>], iteration_bounds = array<i64: 1>, scalar_prefetch = 0 : i64, scratch_operands = 0 : i64, tpu.core_type = #tpu.core_type<tc>, window_params = [{transform_indices = @transform_0, window_bounds = array<i64: 4, 256>}, {pipeline_mode = #tpu.pipeline_mode<synchronous>, transform_indices = @transform_1, window_bounds = array<i64: 256, 10>}, {pipeline_mode = #tpu.pipeline_mode<synchronous>, transform_indices = @transform_2, window_bounds = array<i64: 1, 10>}, {transform_indices = @transform_3, window_bounds = array<i64: 4, 1>}, {transform_indices = @transform_4, window_bounds = array<i64: 1, 8, 128>}]} {
    %c0 = arith.constant 0 : index
    %c0_0 = arith.constant 0 : index
    %0 = vector.load %arg1[%c0, %c0_0] : memref<4x256xf32, #tpu.memory_space<vmem>>, vector<4x256xf32>
    %1 = arith.truncf %0 : vector<4x256xf32> to vector<4x256xbf16>
    %c0_1 = arith.constant 0 : index
    %c0_2 = arith.constant 0 : index
    %2 = vector.load %arg2[%c0_1, %c0_2] : memref<256x10xbf16, #tpu.memory_space<vmem>>, vector<256x10xbf16>
    %c0_3 = arith.constant 0 : index
    %c0_4 = arith.constant 0 : index
    %3 = vector.load %arg3[%c0_3, %c0_4] : memref<1x10xf32, #tpu.memory_space<vmem>>, vector<1x10xf32>
    %c0_5 = arith.constant 0 : index
    %c0_6 = arith.constant 0 : index
    %4 = vector.load %arg4[%c0_5, %c0_6] : memref<4x1xi32, #tpu.memory_space<vmem>>, vector<4x1xi32>
    %cst = arith.constant dense<0.000000e+00> : vector<4x10xf32>
    %5 = tpu.matmul %1, %2, %cst {dimension_numbers = #tpu.dot_dimension_numbers<[1], [0], [0], [1], [0, 0, 1, 1], [], []>} : vector<4x256xbf16>, vector<256x10xbf16>, vector<4x10xf32> -> vector<4x10xf32>
    %6 = vector.broadcast %3 : vector<1x10xf32> to vector<4x10xf32>
    %7 = arith.addf %5, %6 : vector<4x10xf32>
    %c4_i32 = arith.constant 4 : i32
    %8 = arith.muli %arg0, %c4_i32 : i32
    %9 = tpu.iota {dimensions = array<i32: 0>} : vector<4x1xi32>
    %10 = vector.broadcast %8 : i32 to vector<4x1xi32>
    %11 = arith.addi %10, %9 : vector<4x1xi32>
    %c4_i32_7 = arith.constant 4 : i32
    %12 = vector.broadcast %c4_i32_7 : i32 to vector<4x1xi32>
    %13 = arith.cmpi slt, %11, %12 : vector<4x1xi32>
    %cst_8 = arith.constant 0.000000e+00 : f32
    %14 = vector.shape_cast %13 : vector<4x1xi1> to vector<4x1xi1>
    %15 = vector.broadcast %14 : vector<4x1xi1> to vector<4x10xi1>
    %16 = vector.broadcast %cst_8 : f32 to vector<4x10xf32>
    %17 = arith.select %15, %7, %16 : vector<4x10xi1>, vector<4x10xf32>
    %cst_9 = arith.constant dense<0xFF800000> : vector<4xf32>
    %18 = vector.multi_reduction <maximumf>, %17, %cst_9 [1] : vector<4x10xf32> to vector<4xf32>
    %19 = vector.shape_cast %18 : vector<4xf32> to vector<4x1xf32>
    %20 = vector.broadcast %19 : vector<4x1xf32> to vector<4x10xf32>
    %21 = arith.subf %17, %20 : vector<4x10xf32>
    %22 = math.exp %21 : vector<4x10xf32>
    %cst_10 = arith.constant dense<0.000000e+00> : vector<4xf32>
    %23 = vector.multi_reduction <add>, %22, %cst_10 [1] : vector<4x10xf32> to vector<4xf32>
    %24 = vector.shape_cast %23 : vector<4xf32> to vector<4x1xf32>
    %25 = math.log %24 : vector<4x1xf32>
    %26 = arith.addf %19, %25 : vector<4x1xf32>
    %27 = tpu.iota {dimensions = array<i32: 1>} : vector<4x10xi32>
    %28 = vector.broadcast %4 : vector<4x1xi32> to vector<4x10xi32>
    %29 = arith.cmpi eq, %27, %28 : vector<4x10xi32>
    %cst_11 = arith.constant 0.000000e+00 : f32
    %30 = vector.broadcast %cst_11 : f32 to vector<4x10xf32>
    %31 = arith.select %29, %17, %30 : vector<4x10xi1>, vector<4x10xf32>
    %cst_12 = arith.constant dense<0.000000e+00> : vector<4xf32>
    %32 = vector.multi_reduction <add>, %31, %cst_12 [1] : vector<4x10xf32> to vector<4xf32>
    %33 = vector.shape_cast %32 : vector<4xf32> to vector<4x1xf32>
    %34 = arith.subf %26, %33 : vector<4x1xf32>
    %cst_13 = arith.constant 0.000000e+00 : f32
    %35 = vector.broadcast %cst_13 : f32 to vector<4x1xf32>
    %36 = arith.select %13, %34, %35 : vector<4x1xi1>, vector<4x1xf32>
    %37 = vector.shape_cast %36 : vector<4x1xf32> to vector<1x4x1xf32>
    %cst_14 = arith.constant dense<0.000000e+00> : vector<1xf32>
    %38 = vector.multi_reduction <add>, %37, %cst_14 [1, 2] : vector<1x4x1xf32> to vector<1xf32>
    %39 = vector.shape_cast %38 : vector<1xf32> to vector<1x1x1xf32>
    %40 = vector.extract %39[0, 0, 0] : f32 from vector<1x1x1xf32>
    %41 = vector.broadcast %19 : vector<4x1xf32> to vector<4x10xf32>
    %42 = arith.cmpf oeq, %17, %41 : vector<4x10xf32>
    %c10_i32 = arith.constant 10 : i32
    %43 = vector.broadcast %c10_i32 : i32 to vector<4x10xi32>
    %44 = arith.select %42, %27, %43 : vector<4x10xi1>, vector<4x10xi32>
    %cst_15 = arith.constant dense<2147483647> : vector<4xi32>
    %45 = vector.multi_reduction <minsi>, %44, %cst_15 [1] : vector<4x10xi32> to vector<4xi32>
    %46 = vector.shape_cast %45 : vector<4xi32> to vector<4x1xi32>
    %47 = arith.cmpi eq, %46, %4 : vector<4x1xi32>
    %48 = arith.andi %13, %47 : vector<4x1xi1>
    %cst_16 = arith.constant 1.000000e+00 : f32
    %cst_17 = arith.constant 0.000000e+00 : f32
    %49 = vector.broadcast %cst_16 : f32 to vector<4x1xf32>
    %50 = vector.broadcast %cst_17 : f32 to vector<4x1xf32>
    %51 = arith.select %48, %49, %50 : vector<4x1xi1>, vector<4x1xf32>
    %52 = vector.shape_cast %51 : vector<4x1xf32> to vector<1x4x1xf32>
    %cst_18 = arith.constant dense<0.000000e+00> : vector<1xf32>
    %53 = vector.multi_reduction <add>, %52, %cst_18 [1, 2] : vector<1x4x1xf32> to vector<1xf32>
    %54 = vector.shape_cast %53 : vector<1xf32> to vector<1x1x1xf32>
    %55 = vector.extract %54[0, 0, 0] : f32 from vector<1x1x1xf32>
    %56 = tpu.iota {dimensions = array<i32: 1>} : vector<1x8x128xi32>
    %c0_i32 = arith.constant 0 : i32
    %57 = vector.broadcast %c0_i32 : i32 to vector<1x8x128xi32>
    %58 = arith.cmpi eq, %56, %57 : vector<1x8x128xi32>
    %c1_i32 = arith.constant 1 : i32
    %59 = vector.broadcast %c1_i32 : i32 to vector<1x8x128xi32>
    %60 = arith.cmpi eq, %56, %59 : vector<1x8x128xi32>
    %cst_19 = arith.constant 0.000000e+00 : f32
    %61 = vector.broadcast %55 : f32 to vector<1x8x128xf32>
    %62 = vector.broadcast %cst_19 : f32 to vector<1x8x128xf32>
    %63 = arith.select %60, %61, %62 : vector<1x8x128xi1>, vector<1x8x128xf32>
    %64 = vector.broadcast %40 : f32 to vector<1x8x128xf32>
    %65 = arith.select %58, %64, %63 : vector<1x8x128xi1>, vector<1x8x128xf32>
    %c0_20 = arith.constant 0 : index
    %c0_21 = arith.constant 0 : index
    %c0_22 = arith.constant 0 : index
    %66 = vector.load %arg5[%c0_20, %c0_21, %c0_22] : memref<1x8x128xf32, #tpu.memory_space<vmem>>, vector<1x8x128xf32>
    tpu.vector_store %arg5[%c0_20, %c0_21, %c0_22], %65 {strides = array<i32>} : memref<1x8x128xf32, #tpu.memory_space<vmem>>, vector<1x8x128xf32>,
    return
  }
  func.func @transform_0(%arg0: i32) -> (i32, i32) {
    %c0_i32 = arith.constant 0 : i32
    %c0_i32_0 = arith.constant 0 : i32
    return %arg0, %c0_i32 : i32, i32
  }
  func.func @transform_1(%arg0: i32) -> (i32, i32) {
    %c0_i32 = arith.constant 0 : i32
    %c0_i32_0 = arith.constant 0 : i32
    %c0_i32_1 = arith.constant 0 : i32
    return %c0_i32, %c0_i32_0 : i32, i32
  }
  func.func @transform_2(%arg0: i32) -> (i32, i32) {
    %c0_i32 = arith.constant 0 : i32
    %c0_i32_0 = arith.constant 0 : i32
    %c0_i32_1 = arith.constant 0 : i32
    return %c0_i32, %c0_i32_0 : i32, i32
  }
  func.func @transform_3(%arg0: i32) -> (i32, i32) {
    %c0_i32 = arith.constant 0 : i32
    %c0_i32_0 = arith.constant 0 : i32
    return %arg0, %c0_i32 : i32, i32
  }
  func.func @transform_4(%arg0: i32) -> (i32, i32, i32) {
    %c0_i32 = arith.constant 0 : i32
    %c0_i32_0 = arith.constant 0 : i32
    %c0_i32_1 = arith.constant 0 : i32
    return %arg0, %c0_i32, %c0_i32_0 : i32, i32, i32
  }
}

</mosaic_0001>

<bundles_post_ra>
// kernel: tpu_custom_call.1
= control target key start
LH: loop header
LB: loop body
LE: loop exit
PB: predicated region body
PF: predicated region fallthrough
CT: control target
= control target key end

     0   :  { %v390_v2 = vmov 0   ;;  %s506_s0 = inlined_call_operand.vmem [shape: f32[4,256], index: 0, kind: input, shape index: {}]   ;;  %s507_s1 = inlined_call_operand.vmem [shape: bf16[256,10], index: 1, kind: input, shape index: {}]   ;;  %s508_s2 = inlined_call_operand.vmem [shape: f32[1,10], index: 2, kind: input, shape index: {}]   ;;  %s509_s3 = inlined_call_operand.vmem [shape: s32[4,1], index: 3, kind: input, shape index: {}]   ;;  %s510_s4 = inlined_call_operand.hbm [shape: f32[1,8,128], index: 4, kind: output, shape index: {}]  }
   0x1   :  { %v345_v0 = vld [vmem:[%s507_s1 + $0x40] sm:$0xff]   ;;  %343 = vset.pattern.permute.xlu1 %v390_v2  ;;  %344 = vset.pattern.permute.xlu0 %v390_v2  ;;  %v347_v3 = vld [vmem:[%s507_s1 + $0x48] sm:$0xff]   ;;  %v349_v5 = vld [vmem:[%s507_s1 + $0x50] sm:$0xff]  }
   0x2   :  { %v346_v1 = vld [vmem:[%s507_s1] sm:$0xff]   ;;  %314 = vmatprep.subr.bf16.mxu0 %v345_v0  ;;  %v348_v4 = vld [vmem:[%s507_s1 + $0x8] sm:$0xff]   ;;  %v350_v6 = vld [vmem:[%s507_s1 + $0x10] sm:$0xff]  }
   0x3   :  { %315 = vmatpush3.bf16.msra.mxu0 %v346_v1  ;;  %v351_v7 = vld [vmem:[%s507_s1 + $0x58] sm:$0xff]   ;;  %v353_v9 = vld [vmem:[%s507_s1 + $0x60] sm:$0xff]   ;;  %v355_v11 = vld [vmem:[%s507_s1 + $0x68] sm:$0xff]  }
   0x4   :  { %316 = vmatprep.subr.bf16.mxu0 %v347_v3  ;;  %v352_v8 = vld [vmem:[%s507_s1 + $0x18] sm:$0xff]   ;;  %v354_v10 = vld [vmem:[%s507_s1 + $0x20] sm:$0xff]  }
   0x5   :  { %v19_v12 = vld [vmem:[%s506_s0] sm:$0xff] }
   0x6   :  { %v457_v13 = vld [vmem:[%s509_s3] sm:$0xf] }
   0x7   :  { %317 = vmatpush3.bf16.msra.mxu0 %v348_v4 }
   0x8   :  { %318 = vmatprep.subr.bf16.mxu0 %v349_v5 }
   0xb   :  { %319 = vmatpush3.bf16.msra.mxu0 %v350_v6 }
   0xc   :  { %320 = vmatprep.subr.bf16.mxu0 %v351_v7 }
   0xf   :  { %321 = vmatpush3.bf16.msra.mxu0 %v352_v8 }
  0x10   :  { %322 = vmatprep.subr.bf16.mxu0 %v353_v9 }
  0x11   :  { %9 = vsyncpa [#allocation3], 0  ;;  %v21_v14 = vcombine.high %v19_v12, %v19_v12  ;;  %226 = vperm.xlu1 %343, %v457_v13   ;;  %v356_v15 = vld [vmem:[%s507_s1 + $0x28] sm:$0xff]   ;;  %v357_v17 = vld [vmem:[%s507_s1 + $0x70] sm:$0xff]   ;;  %v23_v21 = vpack.c.bf16 %v19_v12, %v19_v12  ;;  %v202_v22 = vlaneseq  ;;  %vm210_vm1 = vcmask 76800  }
  0x12   :  { %v358_v18 = vld [vmem:[%s507_s1 + $0x30] sm:$0xff]   ;;  %v359_v19 = vld [vmem:[%s507_s1 + $0x78] sm:$0xff]   ;;  %v297_v25 = vld [vmem:[%s508_s2] ss:$0 sm:$0xff]  ;;  %vm235_vm5 = vcmask 3072   ;;  %v391_v63 = vmov 0.0  }
  0x13   :  { %323 = vmatpush3.bf16.msra.mxu0 %v354_v10  ;;  %v24_v16 = vpack.c.bf16 %v21_v14, %v21_v14  ;;  %v360_v20 = vld [vmem:[%s507_s1 + $0x38] sm:$0xff]   ;;  %v475_v23 = vshrl.u32 %v202_v22, 7  ;;  %v224_v33 = vand.u32 127, %v202_v22  ;;  %s392_s2 = smov [#allocation2]  }
  0x14   :  { %324 = vmatprep.subr.bf16.mxu0 %v355_v11  ;;  %s289_s25 = sshll.u32 %s392_s2, 4  ;;  %s290_s25 = int_to_ptr.vmem [resolvable:$true] %s289_s25 }
  0x15   :  { %193 = vmatprep.mubr.bf16.mxu0 %v24_v16  ;;  %vm206_vm0 = vcmp.lt.s32.totalorder %v475_v23, 4  ;;  %vm277_vm8 = vcmp.eq.s32.totalorder %v475_v23, 1  ;;  %vm276_vm9 = vcmp.eq.s32.totalorder %v475_v23, 0  ;;  %s366_s27 = scalar_lea.vmem %s290_s25, 128  ;;  %p371_p1 = scmp.lt.s32.totalorder %s290_s25, %s290_s25 }
  0x16   :  { %p367_p0 = scmp.ne.s32.totalorder %s290_s25, %s366_s27  ;;  %p372_p2 = scmp.lt.s32.totalorder %s366_s27, %s366_s27 }
  0x17   :  { %325 = vmatpush3.bf16.msra.mxu0 %v356_v15 }
  0x18   :  { %326 = vmatprep.subr.bf16.mxu0 %v357_v17  ;;  %p373_p3 = por %p372_p2, %p371_p1 }
  0x1a   :  { %p374_p4 = pnand %p373_p3, %p367_p0 }
  0x1b   :  { %327 = vmatpush3.bf16.msra.mxu0 %v358_v18 }
  0x1c   :  { %328 = vmatprep.subr.bf16.mxu0 %v359_v19 }
  0x1f   :  { %329 = vmatpush3.bf16.msra.mxu0 %v360_v20 }
  0x22   :  { %194 = vmatmul.mubr.bf16.vlgmr.msra.gmra.mrb[0].mxu0 %v23_v21 }
  0x90   :  { %v227_v44 = vpop.permute.xlu1 %226 }
  0x91   :  { %vm228_vm3 = vcmp.eq.s32.totalorder %v224_v33, %v227_v44 }
  0xf5   :  { %v330_v24 = vpop.f32.mrb[0].mxu0 }
  0xf6   :  { %v331_v26 = vpop.f32.mrb[1].mxu0 }
  0xf7   :  { %v332_v27 = vadd.f32 %v331_v26, %v330_v24  ;;  %v333_v28 = vpop.f32.mrb[2].mxu0 }
  0xf8   :  { %v334_v29 = vpop.f32.mrb[3].mxu0 }
  0xf9   :  { %v196_v30 = vadd.f32 %v332_v27, %v297_v25 }
  0xfb   :  { %v209_v31 = vsel %vm206_vm0, %v196_v30, 0.0 }
  0xfc   :  { %v211_v32 = vsel %vm210_vm1, %v209_v31, -inf  ;;  %v229_v48 = vsel %vm228_vm3, %v209_v31, 0.0 }
  0xfd   :  { %212 = vmax.xlane.f32.xlu0 %v211_v32  ;;  %v230_v49 = vsel %vm210_vm1, %v229_v48, 0.0 }
 0x18a   :  { %v213_v34 = vpop.xlane.xlu0 %212 }
 0x18b   :  { %v214_v35 = vsub.f32 %v209_v31, %v213_v34  ;;  %vm246_vm2 = vcmp.eq.f32.partialorder %v209_v31, %v213_v34 }
 0x18c   :  { %v247_v36 = vsel %vm246_vm2, %v224_v33, 10 }
 0x18d   :  { %v215_v37 = vmul.f32 1.442695, %v214_v35  ;;  %v248_v38 = vsel %vm210_vm1, %v247_v36, 2147483647 }
 0x18e   :  { %v250_v39 = vshra.s32 %v248_v38, 16  ;;  %v249_v43 = vand.u32 65535, %v248_v38 }
 0x18f   :  { %362 = vpow2.f32 %v215_v37 }
 0x190   :  { %v252_v40 = vcvt.s32.f32 %v250_v39  ;;  %v251_v46 = vcvt.s32.f32 %v249_v43 }
 0x192   :  { %253 = vmin.xlane.f32.xlu0 %v252_v40 }
 0x199   :  { %v363_v41 = vpop.eup %362 }
 0x19a   :  { %v217_v42 = vsel %vm210_vm1, %v363_v41, 0.0 }
 0x19b   :  { %218 = vadd.xlane.f32.xlu1 %v217_v42 }
 0x21f   :  { %v254_v45 = vpop.xlane.xlu0 %253 }
 0x220   :  { %vm255_vm4 = vcmp.eq.f32.partialorder %v252_v40, %v254_v45  ;;  %v260_v52 = vcvt.f32.s32 %v254_v45 }
 0x221   :  { %v256_v47 = vsel %vm255_vm4, %v251_v46, inf }
 0x222   :  { %257 = vmin.xlane.f32.xlu0 %v256_v47  ;;  %v261_v55 = vshll.u32 %v260_v52, 16 }
 0x226   :  { %231 = vadd.xlane.f32.xlu0 %v230_v49 }
 0x228   :  { %v219_v50 = vpop.xlane.xlu1 %218 }
 0x229   :  { %364 = vlog2.f32 %v219_v50 }
 0x233   :  { %v365_v51 = vpop.eup %364 }
 0x234   :  { %v221_v53 = vmul.f32 0.6931472, %v365_v51 }
 0x236   :  { %v222_v58 = vadd.f32 %v221_v53, %v213_v34 }
 0x2af   :  { %v258_v54 = vpop.xlane.xlu0 %257 }
 0x2b0   :  { %v259_v56 = vcvt.f32.s32 %v258_v54 }
 0x2b2   :  { %v262_v57 = vadd.s32 %v261_v55, %v259_v56 }
 0x2b3   :  { %v232_v59 = vpop.xlane.xlu0 %231 }
 0x2b4   :  { %v233_v60 = vsub.f32 %v222_v58, %v232_v59  ;;  %vm263_vm6 = vcmp.eq.s32.totalorder %v262_v57, %v457_v13 }
 0x2b5   :  { %vm264_vm7 = vmand %vm206_vm0, %vm263_vm6 }
 0x2b6   :  { %v234_v61 = vsel %vm206_vm0, %v233_v60, 0.0  ;;  %v265_v0 = vsel %vm264_vm7, 1.0, %v391_v63 }
 0x2b7   :  { %v236_v62 = vsel %vm235_vm5, %v234_v61, 0.0  ;;  %v266_v1 = vsel %vm235_vm5, %v265_v0, 0.0 }
 0x2b8   :  { %237 = vadd.xlane.f32.xlu0 %v236_v62 }
 0x2bc   :  { %267 = vadd.xlane.f32.xlu0 %v266_v1 }
 0x345   :  { %v238_v2 = vpop.xlane.xlu0 %237 }
 0x346   :  { %v239_v3 = vrot.slane %v238_v2, 4 }
 0x348   :  { %v240_v4 = vadd.f32 %v239_v3, %v238_v2 }
 0x349   :  { %v268_v5 = vpop.xlane.xlu0 %267 }
 0x34a   :  { %v241_v6 = vrot.slane %v240_v4, 2  ;;  %v269_v7 = vrot.slane %v268_v5, 4 }
 0x34c   :  { %v270_v8 = vadd.f32 %v269_v7, %v268_v5  ;;  %v242_v9 = vadd.f32 %v241_v6, %v240_v4 }
 0x34e   :  { %v271_v10 = vrot.slane %v270_v8, 2  ;;  %v243_v11 = vrot.slane %v242_v9, 1 }
 0x350   :  { %v272_v12 = vadd.f32 %v271_v10, %v270_v8  ;;  %v244_v13 = vadd.f32 %v243_v11, %v242_v9 }
 0x352   :  { %336 = vpush %v244_v13  ;;  %v273_v14 = vrot.slane %v272_v12, 1 }
 0x354   :  { %v274_v15 = vadd.f32 %v273_v14, %v272_v12 }
 0x356   :  { %338 = vpush %v274_v15 }
 0x383   :  { %s337_s1 = spop %336 }
 0x384   :  { %v280_v17 = vstv %s337_s1 }
 0x387   :  { %s339_s26 = spop %338 }
 0x388   :  { %v278_v16 = vstv %s339_s26 }
 0x389   :  { %v279_v18 = vsel %vm277_vm8, %v278_v16, 0.0 }
 0x38a   :  { %v281_v19 = vsel %vm276_vm9, %v280_v17, %v279_v18 }
 0x38b   :  { %282 = vst [vmem:[#allocation2] sm:$0xff] %v281_v19 }
 0x38c   :  { %377 = shalt.err (!%p374_p4)
}
 0x38d   :  { %s378_s30 = scalar_lea.hbm %s510_s4, 128 }
 0x38e   :  { %p379_p5 = scmp.ne.s32.totalorder %s510_s4, %s378_s30  ;;  %p382_p6 = scmp.lt.u32.totalorder %s378_s30, %s510_s4 }
 0x390   :  { %p384_p7 = pnand %p382_p6, %p379_p5 }
 0x392   :  { %387 = shalt.err (!%p384_p7)
}
 0x393   :  { %292 = dma.vmem_to_hbm [thread:$0]  %s290_s25, 128, %s510_s4, [#allocation3]  }
 0x394   :  { %388 = dma.done.wait [#allocation3], 128  }
 0x395   :  { %389 = vsyncadd [#allocation3], 4294967168 }
 0x396   :  { %296 = vsyncpa [#allocation3], 1 }

</bundles_post_ra>
